<compile_context>
chip_gen: v5e
topology: v5e:2x2
jax: 0.10.0
libtpu: 0.0.40
codegen_flags: <defaults>
</compile_context>

<pallas_src>
import functools

import jax
import jax.numpy as jnp
from jax.experimental import pallas as pl
from jax.experimental.pallas import tpu as pltpu


def _jaccard_partial_kernel(logits_ref, labels_ref, inter_ref, card_ref,
                            inter_acc, card_acc, *,
                            hw, tile, tiles_per_shard, binary):
    """Per-(batch, pixel-shard, pixel-tile) partial intersection/cardinality.

    logits_ref: (C_in, TILE) tile in native dtype, class axis on sublanes.
    labels_ref: (1, TILE) integer labels (native narrow dtype).
    inter_ref / card_ref: (C_out, 1) f32 per-(batch, shard) partial outputs.
    inter_acc / card_acc: (C_out, 1) f32 scratch accumulators.
    """
    i = pl.program_id(2)
    t = pl.program_id(1) * tiles_per_shard + i      # global pixel-tile index

    @pl.when(i == 0)
    def _init():
        inter_acc[...] = jnp.zeros_like(inter_acc)
        card_acc[...] = jnp.zeros_like(card_acc)

    def _accumulate(valid):
        z = logits_ref[...].astype(jnp.float32)              # (C_in, TILE)
        if valid is not None:
            # Mask BEFORE exp/sigmoid: tail lanes of a partial tile hold
            # whatever was in HBM/VMEM (can be +/-inf or NaN).
            z = jnp.where(valid, z, 0.0)
        labels = labels_ref[...].astype(jnp.int32)           # (1, TILE)

        if binary:
            # softmax-free binary branch: probas = [sigmoid(z), 1 - sigmoid(z)]
            pos = pl.reciprocal(1.0 + jnp.exp(-z), approx=False)   # (1, TILE)
            probs = jnp.concatenate([pos, 1.0 - pos], axis=0)      # (2, TILE)
            # Reference pairs pos_prob with (label==1), neg_prob with (label==0).
            one_hot = jnp.concatenate(
                [(labels == 1), (labels == 0)], axis=0).astype(jnp.float32)
        else:
            # Softmax over the class (sublane) axis, computed in f32.
            m = jnp.max(z, axis=0, keepdims=True)
            e = jnp.exp(z - m)
            inv = pl.reciprocal(jnp.sum(e, axis=0, keepdims=True), approx=False)
            probs = e * inv                                          # (C, TILE)
            cls_ids = jax.lax.broadcasted_iota(jnp.int32, probs.shape, 0)
            one_hot = (cls_ids == labels).astype(jnp.float32)        # (C, TILE)

        if valid is not None:
            vf = valid.astype(jnp.float32)
            probs = probs * vf
            one_hot = one_hot * vf

        # Cross-lane (XLU) reductions into tiny per-class accumulators; with
        # multi-hundred-KiB tiles this is negligible next to the DMA time.
        inter_acc[...] += jnp.sum(probs * one_hot, axis=1, keepdims=True)
        card_acc[...] += jnp.sum(probs + one_hot, axis=1, keepdims=True)

    is_tail = (t * tile + tile) > hw

    @pl.when(jnp.logical_not(is_tail))
    def _full_tile():
        _accumulate(None)

    @pl.when(is_tail)
    def _partial_tile():
        lane = jax.lax.broadcasted_iota(jnp.int32, (1, tile), 1)
        _accumulate((t * tile + lane) < hw)

    @pl.when(i == pl.num_programs(2) - 1)
    def _finalize():
        inter_ref[...] = inter_acc[...]
        card_ref[...] = card_acc[...]


def _tpu_vmem_capacity():
    try:
        return int(pltpu.get_tpu_info().vmem_capacity_bytes)
    except Exception:
        return 64 * 1024 * 1024   # conservative (v7x-sized) fallback


def _pick_tile(hw, c_in, c_out, logit_itemsize, label_itemsize, budget):
    """Largest pixel tile (multiple of 128, <=256K px) within a VMEM budget.

    The budget covers double-buffered streaming inputs plus ~6 live f32
    (C_out, TILE) temporaries the compiler keeps for softmax/one-hot math.
    """
    hw128 = ((hw + 127) // 128) * 128
    per_px = 2 * (c_in * logit_itemsize + label_itemsize) + 6 * c_out * 4
    tile = budget // per_px
    tile = (tile // 128) * 128
    tile = max(128, min(tile, 256 * 1024))
    return min(tile, hw128)


def _jaccard_partials(logits3d, labels3d, c_out, binary, tile, p_split,
                      vmem_limit):
    B, c_in, HW = logits3d.shape
    num_tiles = pl.cdiv(HW, tile)
    p_split = max(1, min(p_split, num_tiles))
    tiles_per_shard = pl.cdiv(num_tiles, p_split)
    last_block = num_tiles - 1

    # Clamp the pixel-block index so shards whose tail runs past the real tile
    # range re-read the last in-bounds block (their contribution is masked to
    # zero in-kernel, so this only costs a tiny redundant DMA).
    def in_map(b, p, i):
        return (b, 0, jnp.minimum(p * tiles_per_shard + i, last_block))

    def out_map(b, p, i):
        return (b, p, 0, 0)

    kernel = functools.partial(
        _jaccard_partial_kernel,
        hw=HW, tile=tile, tiles_per_shard=tiles_per_shard, binary=binary)

    return pl.pallas_call(
        kernel,
        out_shape=(
            jax.ShapeDtypeStruct((B, p_split, c_out, 1), jnp.float32),
            jax.ShapeDtypeStruct((B, p_split, c_out, 1), jnp.float32),
        ),
        grid_spec=pltpu.PrefetchScalarGridSpec(
            num_scalar_prefetch=0,
            grid=(B, p_split, tiles_per_shard),
            in_specs=[
                pl.BlockSpec((pl.Squeezed(), c_in, tile), in_map),
                pl.BlockSpec((pl.Squeezed(), 1, tile), in_map),
            ],
            out_specs=(
                pl.BlockSpec((pl.Squeezed(), pl.Squeezed(), c_out, 1), out_map),
                pl.BlockSpec((pl.Squeezed(), pl.Squeezed(), c_out, 1), out_map),
            ),
            scratch_shapes=[
                pltpu.VMEM((c_out, 1), jnp.float32),
                pltpu.VMEM((c_out, 1), jnp.float32),
            ],
        ),
        compiler_params=pltpu.CompilerParams(
            dimension_semantics=("parallel", "parallel", "arbitrary"),
            vmem_limit_bytes=int(vmem_limit),
        ),
    )(logits3d, labels3d)


def jaccard_loss(logits, true, eps=1e-7, *, _tile=None, _p_split=None):
    """Jaccard loss matching the PyTorch reference semantics.

    logits: [B, C, H, W] float (any float dtype; kernel upcasts to f32)
    true:   [B, H, W] or [B, 1, H, W] integer labels
    returns a scalar float32 loss.  `_tile` / `_p_split` are test-only overrides.
    """
    B, C, H, W = logits.shape
    HW = H * W
    true = jnp.reshape(true, (B, H, W))

    binary = (C == 1)
    c_out = 2 if binary else C

    logit_itemsize = jnp.dtype(logits.dtype).itemsize
    # Stream labels in their native narrow integer dtype when possible; only
    # cast (to the narrowest sufficient int) when the dtype cannot be streamed.
    if true.dtype in (jnp.int8, jnp.uint8, jnp.int16, jnp.uint16,
                      jnp.int32, jnp.uint32):
        labels3d = true.reshape(B, 1, HW)
    else:
        tgt = jnp.int8 if c_out <= 127 else jnp.int32
        labels3d = true.reshape(B, 1, HW).astype(tgt)
    label_itemsize = jnp.dtype(labels3d.dtype).itemsize

    vmem_cap = _tpu_vmem_capacity()
    # Generous scoped-VMEM cap (physical minus margin, <=100 MiB), tile budget
    # is ~3/4 of it so the pipeline keeps headroom on every generation.
    vmem_limit = max(min(vmem_cap - (8 << 20), 100 << 20), 32 << 20)
    if _tile is None:
        tile = _pick_tile(HW, C, c_out, logit_itemsize, label_itemsize,
                          budget=(vmem_limit * 3) // 4)
    else:
        tile = int(_tile)

    num_tiles = pl.cdiv(HW, tile)
    if _p_split is None:
        # v7x has 2 TensorCores; with B == 1 the batch axis alone cannot feed
        # both, so also split the pixel tiles across a second parallel axis.
        p_split = 2 if (B == 1 and num_tiles >= 2) else 1
    else:
        p_split = int(_p_split)

    logits3d = logits.reshape(B, C, HW)   # contiguous reshape, no copy
    inter_part, card_part = _jaccard_partials(
        logits3d, labels3d, c_out, binary, tile, p_split, vmem_limit)

    # Tiny final combine (sum over batch/shard, IoU, mean) in plain JAX.
    intersection = jnp.sum(inter_part[..., 0], axis=(0, 1))   # (c_out,)
    cardinality = jnp.sum(card_part[..., 0], axis=(0, 1))     # (c_out,)
    union = cardinality - intersection
    classes_iou = intersection / (union + eps)
    return 1.0 - jnp.mean(classes_iou)


def _jaccard_loss_ref(logits, true, eps=1e-7):
    """Pure-JAX reference mirroring the PyTorch module."""
    B, C, H, W = logits.shape
    true = jnp.reshape(true, (B, H, W)).astype(jnp.int32)
    if C == 1:
        pos = 1.0 / (1.0 + jnp.exp(-logits.astype(jnp.float32)))   # [B,1,H,W]
        probas = jnp.concatenate([pos, 1.0 - pos], axis=1)
        t1h = jax.nn.one_hot(true, 2, dtype=jnp.float32)            # [B,H,W,2]
        t1h = jnp.transpose(t1h, (0, 3, 1, 2))                      # [B,2,H,W]
        true_1_hot = jnp.concatenate([t1h[:, 1:2], t1h[:, 0:1]], axis=1)
    else:
        probas = jax.nn.softmax(logits.astype(jnp.float32), axis=1)
        t1h = jax.nn.one_hot(true, C, dtype=jnp.float32)            # [B,H,W,C]
        true_1_hot = jnp.transpose(t1h, (0, 3, 1, 2))               # [B,C,H,W]
    dims = (0, 2, 3)
    intersection = jnp.sum(probas * true_1_hot, axis=dims)
    cardinality = jnp.sum(probas + true_1_hot, axis=dims)
    union = cardinality - intersection
    return 1.0 - jnp.mean(intersection / (union + eps))


if __name__ == "__main__":
    key = jax.random.PRNGKey(0)
    k1, k2, k3, k4, k5, k6, k7, k8 = jax.random.split(key, 8)

    # 1) Multi-class, H*W divisible by 128, int32 labels.
    B, C, H, W = 2, 4, 16, 16
    logits = jax.random.normal(k1, (B, C, H, W), dtype=jnp.float32)
    true = jax.random.randint(k2, (B, H, W), 0, C, dtype=jnp.int32)
    loss = jax.block_until_ready(jaccard_loss(logits, true))
    ref = _jaccard_loss_ref(logits, true)
    assert jnp.allclose(loss, ref, atol=1e-5, rtol=1e-5), (loss, ref)

    # 2) Ragged spatial size (partial last tile, in-kernel mask) + int8 labels.
    B2, C2, H2, W2 = 2, 3, 10, 10
    logits2 = jax.random.normal(k3, (B2, C2, H2, W2), dtype=jnp.float32)
    true2 = jax.random.randint(k4, (B2, H2, W2), 0, C2,
                               dtype=jnp.int32).astype(jnp.int8)
    loss2 = jax.block_until_ready(jaccard_loss(logits2, true2))
    ref2 = _jaccard_loss_ref(logits2, true2)
    assert jnp.allclose(loss2, ref2, atol=1e-5, rtol=1e-5), (loss2, ref2)

    # 3) Binary (C == 1) path: in-kernel sigmoid, true given as [B, 1, H, W].
    B3, H3, W3 = 2, 16, 16
    logits3 = jax.random.normal(k5, (B3, 1, H3, W3), dtype=jnp.float32)
    true3 = jax.random.randint(k6, (B3, 1, H3, W3), 0, 2, dtype=jnp.int32)
    loss3 = jax.block_until_ready(jaccard_loss(logits3, true3))
    ref3 = _jaccard_loss_ref(logits3, true3)
    assert jnp.allclose(loss3, ref3, atol=1e-5, rtol=1e-5), (loss3, ref3)

    # 4) Megacore pixel-split path (B == 1, P = 2) with a small forced tile:
    #    exercises the clamped index map, the fully-masked tail shard and the
    #    partial-tile mask, at a small shape.
    B4, C4, H4, W4 = 1, 4, 18, 18
    logits4 = jax.random.normal(k7, (B4, C4, H4, W4), dtype=jnp.float32)
    true4 = jax.random.randint(k8, (B4, H4, W4), 0, C4, dtype=jnp.int32)
    loss4 = jax.block_until_ready(
        jaccard_loss(logits4, true4, _tile=128, _p_split=2))
    ref4 = _jaccard_loss_ref(logits4, true4)
    assert jnp.allclose(loss4, ref4, atol=1e-5, rtol=1e-5), (loss4, ref4)

    print("KERNEL_OK")
</pallas_src>

<mosaic_0001>
module attributes {stable_mosaic.version = 11 : i64} {
  func.func @_jaccard_partial_kernel(%arg0: i32, %arg1: i32, %arg2: i32, %arg3: memref<1x4x256xf32, #tpu.memory_space<vmem>>, %arg4: memref<1x1x256xi32, #tpu.memory_space<vmem>>, %arg5: memref<1x1x4x1xf32, #tpu.memory_space<vmem>>, %arg6: memref<1x1x4x1xf32, #tpu.memory_space<vmem>>, %arg7: memref<4x1xf32, #tpu.memory_space<vmem>>, %arg8: memref<4x1xf32, #tpu.memory_space<vmem>>) attributes {dimension_semantics = [#tpu.dimension_semantics<parallel>, #tpu.dimension_semantics<parallel>, #tpu.dimension_semantics<arbitrary>], iteration_bounds = array<i64: 2, 1, 1>, scalar_prefetch = 0 : i64, scratch_operands = 2 : i64, tpu.core_type = #tpu.core_type<tc>, window_params = [{transform_indices = @transform_0, window_bounds = array<i64: 1, 4, 256>}, {transform_indices = @transform_1, window_bounds = array<i64: 1, 1, 256>}, {transform_indices = @transform_2, window_bounds = array<i64: 1, 1, 4, 1>}, {transform_indices = @transform_3, window_bounds = array<i64: 1, 1, 4, 1>}]} {
    %c1_i32 = arith.constant 1 : i32
    %0 = arith.muli %arg1, %c1_i32 : i32
    %1 = arith.addi %0, %arg2 : i32
    %c0_i32 = arith.constant 0 : i32
    %2 = arith.cmpi eq, %arg2, %c0_i32 : i32
    %3 = arith.extui %2 : i1 to i32
    %c0_i32_0 = arith.constant 0 : i32
    %4 = arith.cmpi ne, %3, %c0_i32_0 : i32
    scf.if %4 {
      %cst = arith.constant 0.000000e+00 : f32
      %16 = vector.broadcast %cst : f32 to vector<4x1xf32>
      %c0 = arith.constant 0 : index
      %c0_7 = arith.constant 0 : index
      %17 = vector.load %arg7[%c0, %c0_7] : memref<4x1xf32, #tpu.memory_space<vmem>>, vector<4x1xf32>
      tpu.vector_store %arg7[%c0, %c0_7], %16 {strides = array<i32>} : memref<4x1xf32, #tpu.memory_space<vmem>>, vector<4x1xf32>,
      %cst_8 = arith.constant 0.000000e+00 : f32
      %18 = vector.broadcast %cst_8 : f32 to vector<4x1xf32>
      %c0_9 = arith.constant 0 : index
      %c0_10 = arith.constant 0 : index
      %19 = vector.load %arg8[%c0_9, %c0_10] : memref<4x1xf32, #tpu.memory_space<vmem>>, vector<4x1xf32>
      tpu.vector_store %arg8[%c0_9, %c0_10], %18 {strides = array<i32>} : memref<4x1xf32, #tpu.memory_space<vmem>>, vector<4x1xf32>,
    } else {
    }
    %c256_i32 = arith.constant 256 : i32
    %5 = arith.muli %1, %c256_i32 : i32
    %c256_i32_1 = arith.constant 256 : i32
    %6 = arith.addi %5, %c256_i32_1 : i32
    %c256_i32_2 = arith.constant 256 : i32
    %7 = arith.cmpi sgt, %6, %c256_i32_2 : i32
    %true = arith.constant true
    %8 = arith.xori %7, %true : i1
    %9 = arith.extui %8 : i1 to i32
    %c0_i32_3 = arith.constant 0 : i32
    %10 = arith.cmpi ne, %9, %c0_i32_3 : i32
    scf.if %10 {
      %c0 = arith.constant 0 : index
      %c0_7 = arith.constant 0 : index
      %c0_8 = arith.constant 0 : index
      %16 = vector.load %arg3[%c0, %c0_7, %c0_8] : memref<1x4x256xf32, #tpu.memory_space<vmem>>, vector<1x4x256xf32>
      %17 = vector.shape_cast %16 : vector<1x4x256xf32> to vector<4x256xf32>
      %c0_9 = arith.constant 0 : index
      %c0_10 = arith.constant 0 : index
      %c0_11 = arith.constant 0 : index
      %18 = vector.load %arg4[%c0_9, %c0_10, %c0_11] : memref<1x1x256xi32, #tpu.memory_space<vmem>>, vector<1x1x256xi32>
      %19 = vector.shape_cast %18 : vector<1x1x256xi32> to vector<1x256xi32>
      %cst = arith.constant dense<0xFF800000> : vector<256xf32>
      %20 = vector.multi_reduction <maximumf>, %17, %cst [0] : vector<4x256xf32> to vector<256xf32>
      %21 = vector.shape_cast %20 : vector<256xf32> to vector<1x256xf32>
      %22 = vector.broadcast %21 : vector<1x256xf32> to vector<4x256xf32>
      %23 = arith.subf %17, %22 : vector<4x256xf32>
      %24 = math.exp %23 : vector<4x256xf32>
      %cst_12 = arith.constant dense<0.000000e+00> : vector<256xf32>
      %25 = vector.multi_reduction <add>, %24, %cst_12 [0] : vector<4x256xf32> to vector<256xf32>
      %26 = vector.shape_cast %25 : vector<256xf32> to vector<1x256xf32>
      %27 = tpu.reciprocal %26 : vector<1x256xf32> -> vector<1x256xf32>
      %28 = vector.broadcast %27 : vector<1x256xf32> to vector<4x256xf32>
      %29 = arith.mulf %24, %28 : vector<4x256xf32>
      %30 = tpu.iota {dimensions = array<i32: 0>} : vector<4x256xi32>
      %31 = vector.broadcast %19 : vector<1x256xi32> to vector<4x256xi32>
      %32 = arith.cmpi eq, %30, %31 : vector<4x256xi32>
      %33 = arith.extui %32 : vector<4x256xi1> to vector<4x256xi32>
      %34 = arith.sitofp %33 : vector<4x256xi32> to vector<4x256xf32>
      %c0_13 = arith.constant 0 : index
      %c0_14 = arith.constant 0 : index
      %35 = vector.load %arg7[%c0_13, %c0_14] : memref<4x1xf32, #tpu.memory_space<vmem>>, vector<4x1xf32>
      %36 = arith.mulf %29, %34 : vector<4x256xf32>
      %cst_15 = arith.constant dense<0.000000e+00> : vector<4xf32>
      %37 = vector.multi_reduction <add>, %36, %cst_15 [1] : vector<4x256xf32> to vector<4xf32>
      %38 = vector.shape_cast %37 : vector<4xf32> to vector<4x1xf32>
      %39 = arith.addf %35, %38 : vector<4x1xf32>
      %c0_16 = arith.constant 0 : index
      %c0_17 = arith.constant 0 : index
      %40 = vector.load %arg7[%c0_16, %c0_17] : memref<4x1xf32, #tpu.memory_space<vmem>>, vector<4x1xf32>
      tpu.vector_store %arg7[%c0_16, %c0_17], %39 {strides = array<i32>} : memref<4x1xf32, #tpu.memory_space<vmem>>, vector<4x1xf32>,
      %c0_18 = arith.constant 0 : index
      %c0_19 = arith.constant 0 : index
      %41 = vector.load %arg8[%c0_18, %c0_19] : memref<4x1xf32, #tpu.memory_space<vmem>>, vector<4x1xf32>
      %42 = arith.addf %29, %34 : vector<4x256xf32>
      %cst_20 = arith.constant dense<0.000000e+00> : vector<4xf32>
      %43 = vector.multi_reduction <add>, %42, %cst_20 [1] : vector<4x256xf32> to vector<4xf32>
      %44 = vector.shape_cast %43 : vector<4xf32> to vector<4x1xf32>
      %45 = arith.addf %41, %44 : vector<4x1xf32>
      %c0_21 = arith.constant 0 : index
      %c0_22 = arith.constant 0 : index
      %46 = vector.load %arg8[%c0_21, %c0_22] : memref<4x1xf32, #tpu.memory_space<vmem>>, vector<4x1xf32>
      tpu.vector_store %arg8[%c0_21, %c0_22], %45 {strides = array<i32>} : memref<4x1xf32, #tpu.memory_space<vmem>>, vector<4x1xf32>,
    } else {
    }
    %11 = arith.extui %7 : i1 to i32
    %c0_i32_4 = arith.constant 0 : i32
    %12 = arith.cmpi ne, %11, %c0_i32_4 : i32
    scf.if %12 {
      %16 = tpu.iota {dimensions = array<i32: 1>} : vector<1x256xi32>
      %c256_i32_7 = arith.constant 256 : i32
      %17 = arith.muli %1, %c256_i32_7 : i32
      %18 = vector.broadcast %17 : i32 to vector<1x256xi32>
      %19 = arith.addi %18, %16 : vector<1x256xi32>
      %c256_i32_8 = arith.constant 256 : i32
      %20 = vector.broadcast %c256_i32_8 : i32 to vector<1x256xi32>
      %21 = arith.cmpi slt, %19, %20 : vector<1x256xi32>
      %c0 = arith.constant 0 : index
      %c0_9 = arith.constant 0 : index
      %c0_10 = arith.constant 0 : index
      %22 = vector.load %arg3[%c0, %c0_9, %c0_10] : memref<1x4x256xf32, #tpu.memory_space<vmem>>, vector<1x4x256xf32>
      %23 = vector.shape_cast %22 : vector<1x4x256xf32> to vector<4x256xf32>
      %cst = arith.constant 0.000000e+00 : f32
      %24 = vector.shape_cast %21 : vector<1x256xi1> to vector<1x256xi1>
      %25 = vector.broadcast %24 : vector<1x256xi1> to vector<4x256xi1>
      %26 = vector.broadcast %cst : f32 to vector<4x256xf32>
      %27 = arith.select %25, %23, %26 : vector<4x256xi1>, vector<4x256xf32>
      %c0_11 = arith.constant 0 : index
      %c0_12 = arith.constant 0 : index
      %c0_13 = arith.constant 0 : index
      %28 = vector.load %arg4[%c0_11, %c0_12, %c0_13] : memref<1x1x256xi32, #tpu.memory_space<vmem>>, vector<1x1x256xi32>
      %29 = vector.shape_cast %28 : vector<1x1x256xi32> to vector<1x256xi32>
      %cst_14 = arith.constant dense<0xFF800000> : vector<256xf32>
      %30 = vector.multi_reduction <maximumf>, %27, %cst_14 [0] : vector<4x256xf32> to vector<256xf32>
      %31 = vector.shape_cast %30 : vector<256xf32> to vector<1x256xf32>
      %32 = vector.broadcast %31 : vector<1x256xf32> to vector<4x256xf32>
      %33 = arith.subf %27, %32 : vector<4x256xf32>
      %34 = math.exp %33 : vector<4x256xf32>
      %cst_15 = arith.constant dense<0.000000e+00> : vector<256xf32>
      %35 = vector.multi_reduction <add>, %34, %cst_15 [0] : vector<4x256xf32> to vector<256xf32>
      %36 = vector.shape_cast %35 : vector<256xf32> to vector<1x256xf32>
      %37 = tpu.reciprocal %36 : vector<1x256xf32> -> vector<1x256xf32>
      %38 = vector.broadcast %37 : vector<1x256xf32> to vector<4x256xf32>
      %39 = arith.mulf %34, %38 : vector<4x256xf32>
      %40 = tpu.iota {dimensions = array<i32: 0>} : vector<4x256xi32>
      %41 = vector.broadcast %29 : vector<1x256xi32> to vector<4x256xi32>
      %42 = arith.cmpi eq, %40, %41 : vector<4x256xi32>
      %43 = arith.extui %42 : vector<4x256xi1> to vector<4x256xi32>
      %44 = arith.sitofp %43 : vector<4x256xi32> to vector<4x256xf32>
      %45 = arith.extui %21 : vector<1x256xi1> to vector<1x256xi32>
      %46 = arith.sitofp %45 : vector<1x256xi32> to vector<1x256xf32>
      %47 = vector.broadcast %46 : vector<1x256xf32> to vector<4x256xf32>
      %48 = arith.mulf %39, %47 : vector<4x256xf32>
      %49 = vector.broadcast %46 : vector<1x256xf32> to vector<4x256xf32>
      %50 = arith.mulf %44, %49 : vector<4x256xf32>
      %c0_16 = arith.constant 0 : index
      %c0_17 = arith.constant 0 : index
      %51 = vector.load %arg7[%c0_16, %c0_17] : memref<4x1xf32, #tpu.memory_space<vmem>>, vector<4x1xf32>
      %52 = arith.mulf %48, %50 : vector<4x256xf32>
      %cst_18 = arith.constant dense<0.000000e+00> : vector<4xf32>
      %53 = vector.multi_reduction <add>, %52, %cst_18 [1] : vector<4x256xf32> to vector<4xf32>
      %54 = vector.shape_cast %53 : vector<4xf32> to vector<4x1xf32>
      %55 = arith.addf %51, %54 : vector<4x1xf32>
      %c0_19 = arith.constant 0 : index
      %c0_20 = arith.constant 0 : index
      %56 = vector.load %arg7[%c0_19, %c0_20] : memref<4x1xf32, #tpu.memory_space<vmem>>, vector<4x1xf32>
      tpu.vector_store %arg7[%c0_19, %c0_20], %55 {strides = array<i32>} : memref<4x1xf32, #tpu.memory_space<vmem>>, vector<4x1xf32>,
      %c0_21 = arith.constant 0 : index
      %c0_22 = arith.constant 0 : index
      %57 = vector.load %arg8[%c0_21, %c0_22] : memref<4x1xf32, #tpu.memory_space<vmem>>, vector<4x1xf32>
      %58 = arith.addf %48, %50 : vector<4x256xf32>
      %cst_23 = arith.constant dense<0.000000e+00> : vector<4xf32>
      %59 = vector.multi_reduction <add>, %58, %cst_23 [1] : vector<4x256xf32> to vector<4xf32>
      %60 = vector.shape_cast %59 : vector<4xf32> to vector<4x1xf32>
      %61 = arith.addf %57, %60 : vector<4x1xf32>
      %c0_24 = arith.constant 0 : index
      %c0_25 = arith.constant 0 : index
      %62 = vector.load %arg8[%c0_24, %c0_25] : memref<4x1xf32, #tpu.memory_space<vmem>>, vector<4x1xf32>
      tpu.vector_store %arg8[%c0_24, %c0_25], %61 {strides = array<i32>} : memref<4x1xf32, #tpu.memory_space<vmem>>, vector<4x1xf32>,
    } else {
    }
    %c0_i32_5 = arith.constant 0 : i32
    %13 = arith.cmpi eq, %arg2, %c0_i32_5 : i32
    %14 = arith.extui %13 : i1 to i32
    %c0_i32_6 = arith.constant 0 : i32
    %15 = arith.cmpi ne, %14, %c0_i32_6 : i32
    scf.if %15 {
      %c0 = arith.constant 0 : index
      %c0_7 = arith.constant 0 : index
      %16 = vector.load %arg7[%c0, %c0_7] : memref<4x1xf32, #tpu.memory_space<vmem>>, vector<4x1xf32>
      %c0_8 = arith.constant 0 : index
      %c0_9 = arith.constant 0 : index
      %c0_10 = arith.constant 0 : index
      %c0_11 = arith.constant 0 : index
      %17 = vector.load %arg5[%c0_8, %c0_9, %c0_10, %c0_11] : memref<1x1x4x1xf32, #tpu.memory_space<vmem>>, vector<1x1x4x1xf32>
      %18 = vector.shape_cast %17 : vector<1x1x4x1xf32> to vector<4x1xf32>
      %19 = vector.shape_cast %16 : vector<4x1xf32> to vector<1x1x4x1xf32>
      tpu.vector_store %arg5[%c0_8, %c0_9, %c0_10, %c0_11], %19 {strides = array<i32>} : memref<1x1x4x1xf32, #tpu.memory_space<vmem>>, vector<1x1x4x1xf32>,
      %c0_12 = arith.constant 0 : index
      %c0_13 = arith.constant 0 : index
      %20 = vector.load %arg8[%c0_12, %c0_13] : memref<4x1xf32, #tpu.memory_space<vmem>>, vector<4x1xf32>
      %c0_14 = arith.constant 0 : index
      %c0_15 = arith.constant 0 : index
      %c0_16 = arith.constant 0 : index
      %c0_17 = arith.constant 0 : index
      %21 = vector.load %arg6[%c0_14, %c0_15, %c0_16, %c0_17] : memref<1x1x4x1xf32, #tpu.memory_space<vmem>>, vector<1x1x4x1xf32>
      %22 = vector.shape_cast %21 : vector<1x1x4x1xf32> to vector<4x1xf32>
      %23 = vector.shape_cast %20 : vector<4x1xf32> to vector<1x1x4x1xf32>
      tpu.vector_store %arg6[%c0_14, %c0_15, %c0_16, %c0_17], %23 {strides = array<i32>} : memref<1x1x4x1xf32, #tpu.memory_space<vmem>>, vector<1x1x4x1xf32>,
    } else {
    }
    return
  }
  func.func @transform_0(%arg0: i32, %arg1: i32, %arg2: i32) -> (i32, i32, i32) {
    %c1_i32 = arith.constant 1 : i32
    %0 = arith.muli %arg1, %c1_i32 : i32
    %1 = arith.addi %0, %arg2 : i32
    %c0_i32 = arith.constant 0 : i32
    %2 = arith.minsi %1, %c0_i32 : i32
    %c0_i32_0 = arith.constant 0 : i32
    %c0_i32_1 = arith.constant 0 : i32
    return %arg0, %c0_i32_0, %2 : i32, i32, i32
  }
  func.func @transform_1(%arg0: i32, %arg1: i32, %arg2: i32) -> (i32, i32, i32) {
    %c1_i32 = arith.constant 1 : i32
    %0 = arith.muli %arg1, %c1_i32 : i32
    %1 = arith.addi %0, %arg2 : i32
    %c0_i32 = arith.constant 0 : i32
    %2 = arith.minsi %1, %c0_i32 : i32
    %c0_i32_0 = arith.constant 0 : i32
    %c0_i32_1 = arith.constant 0 : i32
    return %arg0, %c0_i32_0, %2 : i32, i32, i32
  }
  func.func @transform_2(%arg0: i32, %arg1: i32, %arg2: i32) -> (i32, i32, i32, i32) {
    %c0_i32 = arith.constant 0 : i32
    %c0_i32_0 = arith.constant 0 : i32
    %c0_i32_1 = arith.constant 0 : i32
    return %arg0, %arg1, %c0_i32, %c0_i32_0 : i32, i32, i32, i32
  }
  func.func @transform_3(%arg0: i32, %arg1: i32, %arg2: i32) -> (i32, i32, i32, i32) {
    %c0_i32 = arith.constant 0 : i32
    %c0_i32_0 = arith.constant 0 : i32
    %c0_i32_1 = arith.constant 0 : i32
    return %arg0, %arg1, %c0_i32, %c0_i32_0 : i32, i32, i32, i32
  }
}

</mosaic_0001>

<bundles_post_ra>
// kernel: tpu_custom_call.1
= control target key start
LH: loop header
LB: loop body
LE: loop exit
PB: predicated region body
PF: predicated region fallthrough
CT: control target
= control target key end

     0   :  { %9 = vsyncpa [#allocation5], 0  ;;  %s1112_s0 = inlined_call_operand.hbm [shape: f32[2,4,256], index: 0, kind: input, shape index: {}]   ;;  %s1113_s1 = inlined_call_operand.hbm [shape: s32[2,1,256], index: 1, kind: input, shape index: {}]   ;;  %s1114_s2 = inlined_call_operand.vmem [shape: f32[2,1,4,1], index: 2, kind: output, shape index: {0}]   ;;  %s1115_s3 = inlined_call_operand.vmem [shape: f32[2,1,4,1], index: 3, kind: output, shape index: {1}]  }
   0x1   :  { %11 = vsyncpa [#allocation5 + $0x1], 0 }
   0x2   :  { %12 = vsyncpa [#allocation7], 0 }
   0x3   :  { %14 = vsyncpa [#allocation7 + $0x1], 0  ;;  %s969_s12 = smov 0   ;;  %s971_s13 = smov 0  }
   0x4   :  { %s973_s14 = smov 0   ;;  %s975_s15 = smov 0  }
   0x5   :  { %s977_s16 = smov 0   ;;  %s979_s17 = smov 0  }
   0x6 LB: > { %s744_s18 = sadd.s32 4294967295, %s946_s17   ;;  %s39_s19 = sadd.s32 1, %s942_s16  ;;  %s946_s17 = sphi %s979_s17, %s20_s17   ;;  %s942_s16 = sphi %s977_s16, %s1127_s16   ;;  %s938_s15 = sphi %s975_s15, %s1126_s15   ;;  %s934_s14 = sphi %s973_s14, %s1125_s14   ;;  %s930_s13 = sphi %s971_s13, %s1124_s13   ;;  %s926_s12 = sphi %s969_s12, %s1123_s12  }
   0x7   : > { %p41_p0 = scmp.ge.s32.totalorder %s39_s19, 2  ;;  %s54_s20 = sadd.s32 1, %s934_s14 }
   0x8   : > { %p61_p1 = scmp.ne.s32.totalorder %s934_s14, %s930_s13  ;;  %p62_p2 = scmp.eq.s32.totalorder %s946_s17, 0 }
   0x9   : > { %s1129_s19 = smov (%p41_p0, %s39_s19), 0  ;;  %p67_p4 = scmp.ne.s32.totalorder %s930_s13, %s926_s12 }
   0xa   : > { %p1005_p3 = por %p62_p2, %p61_p1  ;;  %s49_s22 = ssub.s32 %s942_s16, %s1129_s19 }
   0xb   : > { %p68_p5 = scmp.eq.s32.totalorder %s744_s18, 0  ;;  %p52_p6 = scmp.eq.s32.totalorder %s49_s22, 0 }
   0xc   : > { %p776_p8 = scmp.lt.s32.totalorder %s946_s17, 2  ;;  %s181_s25 = sand.u32 1, %s934_s14  }
   0xd   : > { %p1012_p7 = por %p68_p5, %p67_p4  ;;  %s764_s26 = sshll.u32 %s942_s16, 3 }
   0xe   : > { %s1018_s24 = scalar_select %p52_p6, %s934_s14, %s54_s20  }
   0xf   : > { %s748_s27 = sshll.u32 %s181_s25, 3  ;;  %s195_s30 = scalar_lea.hbm %s1112_s0, %s764_s26 }
  0x10   : > { %s197_s4 = sshll.u32 %s195_s30, 4  ;;  %s185_s5 = scalar_lea.vmem [#allocation4], %s748_s27  ;;  %s198_s4 = int_to_ptr.hbm [resolvable:$true] %s197_s4 }
  0x11   : > { %s199_s6 = sshll.u32 %s185_s5, 4  ;;  %p1027_p9 = pnand %p776_p8, %p1005_p3  ;;  %s200_s6 = int_to_ptr.vmem [resolvable:$true] %s199_s6 }
  0x12   : > { %p753_p10 = scmp.ge.s32.totalorder %s946_s17, 1  ;;  %p228_p11 = scmp.lt.s32.totalorder %s946_s17, 3 }
  0x13   : > { %s751_s8 = sshll.u32 %s181_s25, 1  ;;  %s182_s9 = scalar_lea.sflag [#allocation5], %s181_s25 }
  0x14   : > { %772 = dma.hbm_to_vmem [thread:$0]  (!%p1027_p9), %s198_s4, 128, %s200_s6, %s182_s9  }
  0x15   : > { %p229_p12 = pnand %p753_p10, %p228_p11  ;;  %s752_s10 = sshll.u32 %s942_s16, 1 }
  0x16   : > { %s210_s11 = scalar_lea.vmem [#allocation6], %s751_s8  ;;  %s219_s21 = scalar_lea.hbm %s1113_s1, %s752_s10 }
  0x17   : > { %s223_s12 = sshll.u32 %s210_s11, 4  ;;  %s221_s22 = sshll.u32 %s219_s21, 4  ;;  %s224_s12 = int_to_ptr.vmem [resolvable:$true] %s223_s12  ;;  %s222_s22 = int_to_ptr.hbm [resolvable:$true] %s221_s22 }
  0x18   : > { %s207_s26 = scalar_lea.sflag [#allocation7], %s181_s25  ;;  %232 = sbr.rel (%p229_p12) target bundleno = 262 (0x106), region = 28 }
  0x19   : > { %775 = dma.hbm_to_vmem [thread:$0]  (!%p1027_p9), %s222_s22, 32, %s224_s12, %s207_s26  }
  0x1a   : > { %s234_s27 = sand.u32 (!%p229_p12), 1, %s930_s13  }
  0x1b   : > { %s754_s28 = sshll.u32 (!%p229_p12), %s234_s27, 3  ;;  %s235_s29 = scalar_lea.sflag (!%p229_p12), [#allocation5], %s234_s27 }
  0x1c   : > { %s238_s30 = scalar_lea.vmem (!%p229_p12), [#allocation4], %s754_s28 }
  0x1d   : > { %917 = dma.done.wait (%p1012_p7), %s235_s29, 128  }
  0x1e   : > { %919 = vsyncadd (%p1012_p7), %s235_s29, 4294967168  ;;  %s755_s4 = sshll.u32 %s234_s27, 1  ;;  %s245_s5 = scalar_lea.sflag [#allocation7], %s234_s27 }
  0x1f   : > { %s1046_s6 = scalar_lea.vmem [#allocation6], %s755_s4 }
  0x20   : > { %921 = dma.done.wait (%p1012_p7), %s245_s5, 32  }
  0x21   : > { %923 = vsyncadd (%p1012_p7), %s245_s5, 4294967264  ;;  %v323_v0 = vld [vmem:[%s238_s30] sm:$0xff]  ;;  %vm331_vm0 = vcmask 1043456   ;;  %v408_v38 = vlaneseq  ;;  %v324_v39 = vld [vmem:[%s1046_s6] sm:$0x3]  ;;  %vm313_vm7 = vcmask 3072  }
  0x22   : > { %326 = vst [vmem:[#allocation1] ss:$2 sm:$0xff] %v323_v0  ;;  %v411_v41 = vperm.slane %v324_v39, 1  ;;  %v410_v48 = vperm.slane %v324_v39, 0  ;;  %v948_v60 = vmov 0.0   ;;  %p294_p13 = scmp.lt.s32.totalorder %s938_s15, 1 }
  0x23   : > { %v409_v40 = vshrl.u32 %v408_v38, 7  ;;  %314 = vst.msk [vmem:[#allocation2] sm:$0xf] %vm313_vm7, %v948_v60 }
  0x24   : > { %315 = vst.msk [vmem:[#allocation3] sm:$0xf] %vm313_vm7, %v948_v60  ;;  %s1131_s15 = smov (!%p294_p13, %s938_s15), 1 }
  0x25   : > { %vm1061_vm1 = vcmp.eq.s32.totalorder %v409_v40, %v411_v41  ;;  %vm412_vm11 = vcmp.eq.s32.totalorder %v409_v40, %v410_v48  ;;  %s756_s23 = sshll.u32 %s1131_s15, 2 }
  0x26   : > { %v759_v61 = vsel %vm1061_vm1, 1.0, %v948_v60  ;;  %s300_s8 = scalar_lea.vmem %s1114_s2, %s756_s23  ;;  %s307_s11 = scalar_lea.vmem %s1115_s3, %s756_s23 }
  0x29   : > { %v327_v1 = vld.sshfl [vmem:[#allocation1] sm:$0xff pattern:$0x75316420]  ;;  %v328_v2 = vld.sshfl [vmem:[#allocation1 + $0x8] sm:$0xff pattern:$0x75316420] }
  0x2a   : > { %v332_v3 = vsel %vm331_vm0, %v327_v1, -inf  ;;  %v339_v4 = vsel %vm331_vm0, %v328_v2, -inf  ;;  %v421_v1 = vrot.slane %v759_v61, 4 }
  0x2b   : > { %v333_v5 = vrot.slane %v332_v3, 4  ;;  %v340_v6 = vrot.slane %v339_v4, 4 }
  0x2d   : > { %v334_v7 = vmax.f32 %v332_v3, %v333_v5  ;;  %v341_v8 = vmax.f32 %v339_v4, %v340_v6  ;;  %v758_v4 = vsel %vm412_vm11, 1.0, %v948_v60 }
  0x2f   : > { %v335_v9 = vrot.slane %v334_v7, 2  ;;  %v342_v10 = vrot.slane %v341_v8, 2 }
  0x31   : > { %v336_v11 = vmax.f32 %v334_v7, %v335_v9  ;;  %v343_v12 = vmax.f32 %v341_v8, %v342_v10  ;;  %v422_v7 = vsel %vm331_vm0, %v758_v4, %v421_v1 }
  0x33   : > { %v337_v13 = vrot.slane %v336_v11, 1  ;;  %v344_v14 = vrot.slane %v343_v12, 1 }
  0x35   : > { %v338_v15 = vmax.f32 %v336_v11, %v337_v13  ;;  %v345_v16 = vmax.f32 %v343_v12, %v344_v14 }
  0x37   : > { %v348_v17 = vrot.slane %v345_v16, 4 }
  0x39   : > { %v349_v18 = vsel %vm331_vm0, %v338_v15, %v348_v17 }
  0x3a   : > { %v351_v19 = vsub.f32 %v323_v0, %v349_v18 }
  0x3c   : > { %v352_v20 = vmul.f32 1.442695, %v351_v19 }
  0x3e   : > { %826 = vpow2.f32 %v352_v20 }
  0x44   : > { %v1055_v21 = vpop.eup %826 }
  0x45   : > { %355 = vst [vmem:[#allocation1] ss:$2 sm:$0xff] %v1055_v21 }
  0x4c   : > { %v356_v22 = vld.sshfl [vmem:[#allocation1] sm:$0xff pattern:$0x75316420]  ;;  %v357_v23 = vld.sshfl [vmem:[#allocation1 + $0x8] sm:$0xff pattern:$0x75316420] }
  0x4d   : > { %v360_v24 = vsel %vm331_vm0, %v356_v22, 0.0  ;;  %v367_v25 = vsel %vm331_vm0, %v357_v23, 0.0 }
  0x4e   : > { %v361_v26 = vrot.slane %v360_v24, 4  ;;  %v368_v27 = vrot.slane %v367_v25, 4 }
  0x50   : > { %v362_v28 = vadd.f32 %v361_v26, %v360_v24  ;;  %v369_v29 = vadd.f32 %v368_v27, %v367_v25  ;;  %v439_v24 = vld [vmem:[#allocation3] sm:$0xf] }
  0x52   : > { %v363_v30 = vrot.slane %v362_v28, 2  ;;  %v370_v31 = vrot.slane %v369_v29, 2 }
  0x54   : > { %v364_v32 = vadd.f32 %v363_v30, %v362_v28  ;;  %v371_v33 = vadd.f32 %v370_v31, %v369_v29 }
  0x56   : > { %v365_v34 = vrot.slane %v364_v32, 1  ;;  %v372_v35 = vrot.slane %v371_v33, 1 }
  0x58   : > { %v366_v36 = vadd.f32 %v365_v34, %v364_v32  ;;  %v373_v37 = vadd.f32 %v372_v35, %v371_v33 }
  0x5a   : > { %828 = vrcp.f32 %v366_v36  ;;  %vm379_vm2 = vweird.f32 %v366_v36  ;;  %v383_v46 = vand.u32 2147483647, %v366_v36  ;;  %v385_v50 = vand.u32 2147483648, %v366_v36 }
  0x5b   : > { %830 = vrcp.f32 %v373_v37  ;;  %v399_v51 = vand.u32 2147483648, %v373_v37  ;;  %vm393_vm4 = vweird.f32 %v373_v37  ;;  %v397_v53 = vand.u32 2147483647, %v373_v37 }
  0x5c   : > { %v386_v58 = vor.u32 1.1754944e-38, %v385_v50  ;;  %vm384_vm9 = vcmp.eq.f32.partialorder %v383_v46, 8.507059e+37 }
  0x5d   : > { %v400_v59 = vor.u32 1.1754944e-38, %v399_v51  ;;  %vm398_vm10 = vcmp.eq.f32.partialorder %v397_v53, 8.507059e+37 }
  0x60   : > { %v829_v42 = vpop.eup %828 }
  0x61   : > { %v831_v43 = vpop.eup %830  ;;  %v375_v44 = vmul.f32 %v829_v42, %v366_v36  ;;  %vm380_vm3 = vweird.f32 %v829_v42 }
  0x62   : > { %v389_v47 = vmul.f32 %v831_v43, %v373_v37  ;;  %vm394_vm5 = vweird.f32 %v831_v43  ;;  %vm1065_vm6 = vmor %vm379_vm2, %vm380_vm3 }
  0x63   : > { %v376_v49 = vsub.f32 1.0, %v375_v44  ;;  %vm395_vm8 = vmor %vm393_vm4, %vm394_vm5 }
  0x64   : > { %v390_v52 = vsub.f32 1.0, %v389_v47 }
  0x65   : > { %v377_v54 = vmul.f32 %v829_v42, %v376_v49 }
  0x66   : > { %v391_v56 = vmul.f32 %v831_v43, %v390_v52 }
  0x67   : > { %v378_v57 = vadd.f32 %v829_v42, %v377_v54 }
  0x68   : > { %v392_v62 = vadd.f32 %v831_v43, %v391_v56 }
  0x69   : > { %v382_v63 = vsel %vm1065_vm6, %v829_v42, %v378_v57 }
  0x6a   : > { %v396_v0 = vsel %vm395_vm8, %v831_v43, %v392_v62  ;;  %v387_v2 = vsel %vm384_vm9, %v386_v58, %v382_v63 }
  0x6b   : > { %v401_v3 = vsel %vm398_vm10, %v400_v59, %v396_v0 }
  0x6c   : > { %v404_v5 = vrot.slane %v401_v3, 4 }
  0x6e   : > { %v405_v6 = vsel %vm331_vm0, %v387_v2, %v404_v5 }
  0x6f   : > { %v407_v8 = vmul.f32 %v1055_v21, %v405_v6  ;;  %v418_v21 = vld [vmem:[#allocation2] sm:$0xf] }
  0x71   : > { %v424_v9 = vmul.f32 %v422_v7, %v407_v8  ;;  %v440_v10 = vadd.f32 %v422_v7, %v407_v8 }
  0x73   : > { %426 = vst [vmem:[#allocation1] ss:$2 sm:$0xff] %v424_v9 }
  0x7a   : > { %v427_v11 = vld.sshfl [vmem:[#allocation1] sm:$0xff pattern:$0x75316420]  ;;  %v428_v12 = vld.sshfl [vmem:[#allocation1 + $0x8] sm:$0xff pattern:$0x75316420] }
  0x7b   : > { %v431_v13 = vsel %vm331_vm0, %v427_v11, 0.0  ;;  %v432_v14 = vsel %vm331_vm0, %v428_v12, 0.0  ;;  %442 = vst [vmem:[#allocation1] ss:$2 sm:$0xff] %v440_v10 }
  0x7c   : > { %v433_v15 = vadd.f32 %v432_v14, %v431_v13 }
  0x7e   : > { %434 = vadd.xlane.f32.xlu0 %v433_v15 }
  0x82   : > { %v443_v16 = vld.sshfl [vmem:[#allocation1] sm:$0xff pattern:$0x75316420]  ;;  %v444_v17 = vld.sshfl [vmem:[#allocation1 + $0x8] sm:$0xff pattern:$0x75316420] }
  0x83   : > { %v447_v18 = vsel %vm331_vm0, %v443_v16, 0.0  ;;  %v448_v19 = vsel %vm331_vm0, %v444_v17, 0.0 }
  0x84   : > { %v449_v20 = vadd.f32 %v448_v19, %v447_v18 }
  0x86   : > { %450 = vadd.xlane.f32.xlu0 %v449_v20 }
  0xf1   : > { %v435_v22 = vpop.xlane.xlu0 %434 }
  0xf2   : > { %v436_v23 = vadd.f32 %v435_v22, %v418_v21 }
  0xf4   : > { %438 = vst.msk [vmem:[#allocation2] sm:$0xf] %vm313_vm7, %v436_v23 }
  0xf9   : > { %v451_v25 = vpop.xlane.xlu0 %450 }
  0xfa   : > { %v452_v26 = vadd.f32 %v451_v25, %v439_v24 }
  0xfb   : > { %v584_v27 = vld [vmem:[#allocation2] sm:$0xf] }
  0xfc   : > { %586 = vst.msk [vmem:[%s300_s8] sm:$0xf] %vm313_vm7, %v584_v27 }
  0xfd   : > { %453 = vst.msk [vmem:[#allocation3] sm:$0xf] %vm313_vm7, %v452_v26 }
 0x104   : > { %v587_v28 = vld [vmem:[#allocation3] sm:$0xf] }
 0x105   : > { %588 = vst.msk [vmem:[%s307_s11] sm:$0xf] %vm313_vm7, %v587_v28 }
 0x106 PF: > { %s20_s17 = sadd.s32 1, %s946_s17   ;;  %s1123_s12 = smov %s930_s13 }
 0x107   : > { %p17_p0 = scmp.ge.s32.totalorder %s20_s17, 4   ;;  %s1124_s13 = smov %s934_s14 }
 0x108   : > { %s1125_s14 = smov %s1018_s24  ;;  %s1126_s15 = smov %s942_s16 }
 0x109   : > { %s1127_s16 = smov %s1129_s19  ;;  %19 = sbr.rel (!%p17_p0) target bundleno = 6 (0x6), region = 109 }
 0x10e   :  { %634 = vsyncpa [#allocation5], 1 }
 0x10f   :  { %636 = vsyncpa [#allocation5 + $0x1], 1 }
 0x110   :  { %637 = vsyncpa [#allocation7], 1 }
 0x111   :  { %639 = vsyncpa [#allocation7 + $0x1], 1 }

</bundles_post_ra>
